<compile_context>
chip_gen: v7x
topology: tpu7x:2x2x1
jax: 0.10.0
libtpu: 0.0.40
codegen_flags: <defaults>
</compile_context>

<pallas_src>
import functools
import math

import jax
import jax.numpy as jnp
from jax.experimental import pallas as pl
from jax.experimental.pallas import tpu as pltpu


# ----------------------------------------------------------------------------
# rotate_weight — faithful port of the PyTorch helper (parameter preprocessing)
# ----------------------------------------------------------------------------
def rotate_weight(weight, Q, pre=True):
    """weight: (out_features, in_features); Q: (q, q)."""
    dtype = weight.dtype
    out_features, in_features = weight.shape
    q_features = Q.shape[0]
    head_wise = (in_features != q_features) if pre else (out_features != q_features)
    w = weight.astype(jnp.float32)
    Qf = Q.astype(jnp.float32)
    if pre:
        if head_wise:
            w = w.reshape(out_features, -1, q_features)
            w = jnp.matmul(w, Qf).reshape(out_features, -1)
        else:
            w = jnp.matmul(w, Qf)
    elif head_wise:
        w = w.T.reshape(in_features, -1, q_features)
        w = jnp.matmul(w, Qf).reshape(in_features, -1).T
    else:
        w = jnp.matmul(Qf.T, w)
    return w.astype(dtype)


def get_rotated_weights(weight, bias, Q_pre=None, Q_post=None):
    w = weight
    b = bias
    if Q_pre is not None:
        w = rotate_weight(w, Q_pre, pre=True)
    if Q_post is not None:
        w = rotate_weight(w, Q_post, pre=False)
        if b is not None:
            b = rotate_weight(b[:, None], Q_post, pre=False)[:, 0]
    return w, b


def _round_up(x, m):
    return ((x + m - 1) // m) * m


def prepare_rotate_linear(weight, bias=None, Q_pre=None, Q_post=None,
                          compute_dtype=jnp.bfloat16):
    """One-time preprocessing.

    Returns (w_t_padded, bias2d_padded_or_None, out_features):
      w_t_padded : (round_up(K,128), round_up(N,128)) in compute_dtype
      bias2d     : (1, round_up(N,128)) float32 (or None)
    The per-call forward only runs the Pallas matmul kernel — no per-call
    rotation / transpose / weight cast / weight padding.

    NOTE: with the default compute_dtype=bf16 the kernel casts the activation
    tile to bf16 before the MXU dot (explicit inference-quality choice); pass
    compute_dtype=jnp.float32 for bit-faithful f32 compute.
    """
    w_rot, b_rot = get_rotated_weights(weight, bias, Q_pre, Q_post)
    out_features, in_features = w_rot.shape
    k_pad = _round_up(in_features, 128)
    n_pad = _round_up(out_features, 128)

    w_t = jnp.asarray(w_rot.T, dtype=compute_dtype)          # (K, N)
    if (k_pad, n_pad) != (in_features, out_features):
        w_t = jnp.pad(w_t, ((0, k_pad - in_features), (0, n_pad - out_features)))

    if b_rot is None:
        b2d = None
    else:
        b2d = jnp.asarray(b_rot, jnp.float32).reshape(1, out_features)
        if n_pad != out_features:
            b2d = jnp.pad(b2d, ((0, 0), (0, n_pad - out_features)))
    return w_t, b2d, out_features


# ----------------------------------------------------------------------------
# Pallas kernels: y = x @ W^T (+ b), tiled, f32 accumulation
# ----------------------------------------------------------------------------
def _make_linear_kernel(has_bias, use_acc_scratch):
    """Kernel factory.

    use_acc_scratch=False: output dtype is f32 → accumulate directly into the
    resident output block (no scratch, no final copy).  Otherwise accumulate
    in an f32 VMEM scratch and cast once at the last K step.
    Bias (f32) initializes the accumulator at k==0.
    The x tile is cast to the weight dtype in VMEM (no wrapper HBM pass).
    """
    def kernel(*refs):
        if use_acc_scratch:
            *io_refs, acc_ref = refs
        else:
            io_refs = refs
        if has_bias:
            x_ref, wt_ref, b_ref, o_ref = io_refs
        else:
            x_ref, wt_ref, o_ref = io_refs
            b_ref = None
        acc = acc_ref if use_acc_scratch else o_ref
        k = pl.program_id(2)

        @pl.when(k == 0)
        def _():
            if has_bias:
                acc[...] = jnp.broadcast_to(b_ref[...], acc.shape)
            else:
                acc[...] = jnp.zeros_like(acc)

        x = x_ref[...]
        if x.dtype != wt_ref.dtype:
            x = x.astype(wt_ref.dtype)          # per-tile cast (VPU, in VMEM)
        acc[...] += jnp.dot(x, wt_ref[...], preferred_element_type=jnp.float32)

        if use_acc_scratch:
            @pl.when(k == pl.num_programs(2) - 1)
            def _():
                o_ref[...] = acc[...].astype(o_ref.dtype)

    return kernel


# ----------------------------------------------------------------------------
# Hardware query + tile selection
# ----------------------------------------------------------------------------
@functools.lru_cache(maxsize=1)
def _tpu_vmem_and_cores():
    """(vmem_capacity_bytes, tensorcores_per_chip) with conservative fallback."""
    vmem_cap = 64 * 1024 * 1024        # conservative (v7x-sized) default
    cores = 1
    try:
        info = pltpu.get_tpu_info()
        v = getattr(info, "vmem_capacity_bytes", None)
        if isinstance(v, int) and v > 0:
            vmem_cap = int(v)
        for attr in ("num_cores", "num_tensorcores", "tensorcores_per_chip",
                     "cores_per_chip", "core_count"):
            c = getattr(info, attr, None)
            if isinstance(c, int) and c > 0:
                cores = int(c)
                break
    except Exception:
        pass
    return vmem_cap, cores


def _sublane(dtype):
    return {4: 8, 2: 16, 1: 32}.get(jnp.dtype(dtype).itemsize, 8)


def _largest_tile(total, unit, cap):
    """Largest t = unit*d with d | (total//unit) and t <= cap (>= unit)."""
    n_units = max(total // unit, 1)
    best = 1
    d = 1
    while d * d <= n_units:
        if n_units % d == 0:
            for cand in (d, n_units // d):
                if cand * unit <= cap and cand > best:
                    best = cand
        d += 1
    return best * unit


def _select_tiles(M, N_pad, K_pad, x_dtype, w_dtype, out_dtype, has_bias,
                  budget, cores):
    sub = max(_sublane(x_dtype), _sublane(out_dtype))
    m_al = _round_up(M, sub)

    # M tile: prefer a divisor of the sublane-aligned M (no extra padding);
    # fall back to 512 with a little padding if the divisor structure is
    # degenerate — fewer M blocks => less weight re-streaming (key on v5e).
    tm = _largest_tile(m_al, sub, 512)
    if tm < 256 and m_al > 512:
        tm = 512
    # tn / tk must divide the pre-padded weight dims (no per-call weight pad).
    tn = _largest_tile(N_pad, 128, 1024)
    tk = _largest_tile(K_pad, 128, 2048)

    # Megacore split only on multi-TC chips (v7x): make sure at least one
    # *parallel* axis has >= 2 blocks.  On single-TC v5e/v6e keep tn lane-dense.
    m_blocks = pl.cdiv(m_al, tm)
    if cores >= 2 and m_blocks < 2 and (N_pad // tn) < 2 and N_pad >= 256:
        tn = _largest_tile(N_pad, 128, max(128, tn // 2))

    xi = jnp.dtype(x_dtype).itemsize
    wi = jnp.dtype(w_dtype).itemsize
    oi = jnp.dtype(out_dtype).itemsize
    acc_scratch = jnp.dtype(out_dtype) != jnp.dtype(jnp.float32)

    def vmem_need(tm_, tn_, tk_):
        need = (2 * (tm_ * tk_ * xi + tk_ * tn_ * wi)   # double-buffered inputs
                + 2 * tm_ * tn_ * oi)                   # double-buffered output
        if acc_scratch:
            need += tm_ * tn_ * 4                       # f32 accumulator
        if has_bias:
            need += 2 * tn_ * 4                         # f32 bias tile
        return need

    while vmem_need(tm, tn, tk) > budget and tk > 128:
        tk = _largest_tile(K_pad, 128, max(128, tk // 2))
    while vmem_need(tm, tn, tk) > budget and tn > 128:
        tn = _largest_tile(N_pad, 128, max(128, tn // 2))
    while vmem_need(tm, tn, tk) > budget and tm > sub:
        tm = max(sub, _round_up(tm // 2, sub))
    return tm, tn, tk, vmem_need(tm, tn, tk), acc_scratch


# ----------------------------------------------------------------------------
# Hot-path linear
# ----------------------------------------------------------------------------
def pallas_linear(x2d, w_t, bias2d=None, out_features=None):
    """y = x2d @ w_t (+ bias).  x2d: (M, K); w_t: (K_pad, N_pad) pre-padded;
    bias2d: (1, N_pad) f32 or None; out_features: logical N (for slicing)."""
    M, K = x2d.shape
    K_pad, N_pad = w_t.shape
    assert K <= K_pad, (K, K_pad)
    n_out = N_pad if out_features is None else out_features
    out_dtype = x2d.dtype

    vmem_cap, cores = _tpu_vmem_and_cores()
    budget = max(int(vmem_cap * 0.60), 32 << 20)
    tm, tn, tk, vmem_need, acc_scratch = _select_tiles(
        M, N_pad, K_pad, x2d.dtype, w_t.dtype, out_dtype,
        bias2d is not None, budget, cores)

    # Only the activation is ever padded on the hot path (weight/bias are
    # pre-padded once in prepare_rotate_linear).
    M_p = _round_up(M, tm)
    if (M_p, K_pad) != (M, K):
        x_p = jnp.pad(x2d, ((0, M_p - M), (0, K_pad - K)))
    else:
        x_p = x2d

    grid = (M_p // tm, N_pad // tn, K_pad // tk)

    xi = jnp.dtype(x2d.dtype).itemsize
    wi = jnp.dtype(w_t.dtype).itemsize
    oi = jnp.dtype(out_dtype).itemsize
    cost = pl.CostEstimate(
        flops=2 * M_p * N_pad * K_pad,
        transcendentals=0,
        bytes_accessed=(grid[1] * M_p * K_pad * xi       # x streamed per N block
                        + grid[0] * K_pad * N_pad * wi   # W streamed per M block
                        + M_p * N_pad * oi),             # output
    )
    vmem_limit = int(min(vmem_cap - (16 << 20),
                         max(vmem_need + (16 << 20), 32 << 20)))
    compiler_params = pltpu.CompilerParams(
        dimension_semantics=("parallel", "parallel", "arbitrary"),
        vmem_limit_bytes=vmem_limit,
    )

    x_spec = pl.BlockSpec((tm, tk), lambda i, j, k: (i, k))
    # NOTE: if a profile shows exposed weight DMA between K steps on v5e/v6e,
    # consider pipeline_mode=pl.Buffered(3) on w_spec (extra tk*tn buffer;
    # re-check the 64 MiB budget before enabling on v7x).
    w_spec = pl.BlockSpec((tk, tn), lambda i, j, k: (k, j))
    out_spec = pl.BlockSpec((tm, tn), lambda i, j, k: (i, j))
    scratch = [pltpu.VMEM((tm, tn), jnp.float32)] if acc_scratch else []

    has_bias = bias2d is not None
    kernel = _make_linear_kernel(has_bias, acc_scratch)
    in_specs = [x_spec, w_spec]
    args = [x_p, w_t]
    if has_bias:
        in_specs.append(pl.BlockSpec((1, tn), lambda i, j, k: (0, j)))
        args.append(bias2d)

    y_p = pl.pallas_call(
        kernel,
        out_shape=jax.ShapeDtypeStruct((M_p, N_pad), out_dtype),
        grid_spec=pltpu.PrefetchScalarGridSpec(
            num_scalar_prefetch=0, grid=grid,
            in_specs=in_specs, out_specs=out_spec,
            scratch_shapes=scratch),
        compiler_params=compiler_params,
        cost_estimate=cost,
    )(*args)

    if (M_p, N_pad) != (M, n_out):
        y_p = y_p[:M, :n_out]
    return y_p


def rotate_linear_forward(x, w_t, bias2d=None, out_features=None):
    """x: (..., in_features); (w_t, bias2d, out_features) from
    prepare_rotate_linear.  Output dtype matches x.dtype."""
    K = x.shape[-1]
    K_pad, N_pad = w_t.shape
    lead = x.shape[:-1]
    M = math.prod(lead) if lead else 1
    y2d = pallas_linear(x.reshape(M, K), w_t, bias2d, out_features)
    n_out = N_pad if out_features is None else out_features
    return y2d.reshape(*lead, n_out)


# ----------------------------------------------------------------------------
# Demo / self-test
# ----------------------------------------------------------------------------
if __name__ == "__main__":
    key = jax.random.PRNGKey(0)
    k_x, k_w, k_b, k_qpre, k_qpost, k_x2, k_w2 = jax.random.split(key, 7)

    # ---- case 1: head-wise Q_pre + full Q_post, bias, f32 compute ----------
    batch, seq = 2, 8
    in_features, out_features = 128, 192
    head_dim = 32  # Q_pre is head-wise: in_features = 4 heads * 32

    x = jax.random.normal(k_x, (batch, seq, in_features), dtype=jnp.float32)
    weight = jax.random.normal(k_w, (out_features, in_features), jnp.float32) * 0.05
    bias = jax.random.normal(k_b, (out_features,), jnp.float32) * 0.1
    Q_pre = jax.random.normal(k_qpre, (head_dim, head_dim), jnp.float32)
    Q_post = jax.random.normal(k_qpost, (out_features, out_features), jnp.float32) * 0.1

    fwd = jax.jit(rotate_linear_forward, static_argnames=("out_features",))

    w_t, b_prep, n_out = prepare_rotate_linear(
        weight, bias, Q_pre, Q_post, compute_dtype=jnp.float32)
    y = jax.block_until_ready(fwd(x, w_t, b_prep, out_features=n_out))

    w_ref, b_ref = get_rotated_weights(weight, bias, Q_pre, Q_post)
    y_ref = jnp.einsum("bsk,nk->bsn", x, w_ref) + b_ref
    assert y.shape == (batch, seq, out_features)
    assert jnp.allclose(y, y_ref, atol=1e-2, rtol=1e-2), float(jnp.abs(y - y_ref).max())

    # ---- case 2: no rotation, no bias, non-aligned M / N / K, f32 ----------
    x2 = jax.random.normal(k_x2, (2, 5, 96), dtype=jnp.float32)
    w2 = jax.random.normal(k_w2, (80, 96), dtype=jnp.float32) * 0.05
    w2_t, b2, n2 = prepare_rotate_linear(w2, None, None, None,
                                         compute_dtype=jnp.float32)
    y2 = jax.block_until_ready(fwd(x2, w2_t, b2, out_features=n2))
    y2_ref = jnp.einsum("bsk,nk->bsn", x2, w2)
    assert y2.shape == (2, 5, 80)
    assert jnp.allclose(y2, y2_ref, atol=1e-2, rtol=1e-2), float(jnp.abs(y2 - y2_ref).max())

    # ---- case 3: default bf16 compute dtype (weight-BW optimized path) -----
    w_t3, b3, n3 = prepare_rotate_linear(weight, bias, Q_pre, Q_post)  # bf16
    y3 = jax.block_until_ready(fwd(x, w_t3, b3, out_features=n3))
    y3_ref = (jnp.einsum("bsk,kn->bsn",
                         x.astype(jnp.bfloat16),
                         w_t3[:in_features, :out_features],
                         preferred_element_type=jnp.float32)
              + b3[0, :out_features])
    assert y3.shape == (batch, seq, out_features)
    assert y3.dtype == x.dtype
    assert jnp.allclose(y3, y3_ref, atol=1e-2, rtol=1e-2), float(jnp.abs(y3 - y3_ref).max())

    print("KERNEL_OK")
</pallas_src>

<mosaic_0001>
module attributes {stable_mosaic.version = 11 : i64} {
  func.func @kernel(%arg0: i32, %arg1: i32, %arg2: i32, %arg3: memref<16x128xf32, #tpu.memory_space<vmem>>, %arg4: memref<128x256xf32, #tpu.memory_space<vmem>>, %arg5: memref<1x256xf32, #tpu.memory_space<vmem>>, %arg6: memref<16x256xf32, #tpu.memory_space<vmem>>) attributes {dimension_semantics = [#tpu.dimension_semantics<parallel>, #tpu.dimension_semantics<parallel>, #tpu.dimension_semantics<arbitrary>], iteration_bounds = array<i64: 1, 1, 1>, scalar_prefetch = 0 : i64, scratch_operands = 0 : i64, tpu.core_type = #tpu.core_type<tc>, window_params = [{transform_indices = @transform_0, window_bounds = array<i64: 16, 128>}, {transform_indices = @transform_1, window_bounds = array<i64: 128, 256>}, {transform_indices = @transform_2, window_bounds = array<i64: 1, 256>}, {transform_indices = @transform_3, window_bounds = array<i64: 16, 256>}]} {
    %c0_i32 = arith.constant 0 : i32
    %0 = arith.cmpi eq, %arg2, %c0_i32 : i32
    %1 = arith.extui %0 : i1 to i32
    %c0_i32_0 = arith.constant 0 : i32
    %2 = arith.cmpi ne, %1, %c0_i32_0 : i32
    scf.if %2 {
      %c0_8 = arith.constant 0 : index
      %c0_9 = arith.constant 0 : index
      %9 = vector.load %arg5[%c0_8, %c0_9] : memref<1x256xf32, #tpu.memory_space<vmem>>, vector<1x256xf32>
      %10 = vector.shape_cast %9 : vector<1x256xf32> to vector<1x256xf32>
      %11 = vector.broadcast %10 : vector<1x256xf32> to vector<16x256xf32>
      %c0_10 = arith.constant 0 : index
      %c0_11 = arith.constant 0 : index
      %12 = vector.load %arg6[%c0_10, %c0_11] : memref<16x256xf32, #tpu.memory_space<vmem>>, vector<16x256xf32>
      tpu.vector_store %arg6[%c0_10, %c0_11], %11 {strides = array<i32>} : memref<16x256xf32, #tpu.memory_space<vmem>>, vector<16x256xf32>,
    } else {
    }
    %c0 = arith.constant 0 : index
    %c0_1 = arith.constant 0 : index
    %3 = vector.load %arg3[%c0, %c0_1] : memref<16x128xf32, #tpu.memory_space<vmem>>, vector<16x128xf32>
    %c0_2 = arith.constant 0 : index
    %c0_3 = arith.constant 0 : index
    %4 = vector.load %arg6[%c0_2, %c0_3] : memref<16x256xf32, #tpu.memory_space<vmem>>, vector<16x256xf32>
    %c0_4 = arith.constant 0 : index
    %c0_5 = arith.constant 0 : index
    %5 = vector.load %arg4[%c0_4, %c0_5] : memref<128x256xf32, #tpu.memory_space<vmem>>, vector<128x256xf32>
    %cst = arith.constant dense<0.000000e+00> : vector<16x256xf32>
    %6 = tpu.matmul %3, %5, %cst {dimension_numbers = #tpu.dot_dimension_numbers<[1], [0], [0], [1], [0, 0, 1, 1], [], []>} : vector<16x128xf32>, vector<128x256xf32>, vector<16x256xf32> -> vector<16x256xf32>
    %7 = arith.addf %4, %6 : vector<16x256xf32>
    %c0_6 = arith.constant 0 : index
    %c0_7 = arith.constant 0 : index
    %8 = vector.load %arg6[%c0_6, %c0_7] : memref<16x256xf32, #tpu.memory_space<vmem>>, vector<16x256xf32>
    tpu.vector_store %arg6[%c0_6, %c0_7], %7 {strides = array<i32>} : memref<16x256xf32, #tpu.memory_space<vmem>>, vector<16x256xf32>,
    return
  }
  func.func @transform_0(%arg0: i32, %arg1: i32, %arg2: i32) -> (i32, i32) {
    %c0_i32 = arith.constant 0 : i32
    return %arg0, %arg2 : i32, i32
  }
  func.func @transform_1(%arg0: i32, %arg1: i32, %arg2: i32) -> (i32, i32) {
    %c0_i32 = arith.constant 0 : i32
    return %arg2, %arg1 : i32, i32
  }
  func.func @transform_2(%arg0: i32, %arg1: i32, %arg2: i32) -> (i32, i32) {
    %c0_i32 = arith.constant 0 : i32
    %c0_i32_0 = arith.constant 0 : i32
    return %c0_i32, %arg1 : i32, i32
  }
  func.func @transform_3(%arg0: i32, %arg1: i32, %arg2: i32) -> (i32, i32) {
    %c0_i32 = arith.constant 0 : i32
    return %arg0, %arg1 : i32, i32
  }
}

</mosaic_0001>

<bundles_post_ra>
// kernel: rotate_linear_forward.1
= control target key start
LH: loop header
LB: loop body
LE: loop exit
PB: predicated region body
PF: predicated region fallthrough
CT: control target
= control target key end

     0   :  { %8 = vsyncpa [#allocation3], 0  ;;  %s360_s0 = inlined_call_operand.hbm [shape: f32[16,128], index: 0, kind: input, shape index: {}]   ;;  %s361_s1 = inlined_call_operand.hbm [shape: f32[128,256], index: 1, kind: input, shape index: {}]   ;;  %s362_s2 = inlined_call_operand.vmem [shape: f32[1,256], index: 2, kind: input, shape index: {}]   ;;  %s363_s3 = inlined_call_operand.vmem [shape: f32[16,256], index: 3, kind: output, shape index: {}]  }
   0x1   :  { %9 = vsyncpa [#allocation5], 0  ;;  %s294_s12 = smov [#allocation2]   ;;  %s246_s16 = scalar_lea.hbm %s360_s0, 256 }
   0x2   :  { %s15_s13 = sshll.u32 %s294_s12, 4  ;;  %p247_p0 = scmp.ne.s32.totalorder %s360_s0, %s246_s16  ;;  %s16_s13 = int_to_ptr.vmem [resolvable:$true] %s15_s13 }
   0x3   :  { %p250_p1 = scmp.lt.u32.totalorder %s246_s16, %s360_s0 }
   0x5   :  { %p252_p2 = pnand %p250_p1, %p247_p0 }
   0x7   :  { %255 = shalt.err (!%p252_p2)
}
   0x8   :  { %s256_s21 = scalar_lea.vmem %s16_s13, 256  ;;  %p261_p4 = scmp.lt.s32.totalorder %s16_s13, %s16_s13 }
   0x9   :  { %p257_p3 = scmp.ne.s32.totalorder %s16_s13, %s256_s21  ;;  %p262_p5 = scmp.lt.s32.totalorder %s256_s21, %s256_s21 }
   0xb   :  { %p263_p6 = por %p262_p5, %p261_p4 }
   0xd   :  { %p264_p7 = pnand %p263_p6, %p257_p3 }
   0xf   :  { %267 = shalt.err (!%p264_p7)
}
  0x10   :  { %s295_s22 = smov 128   ;;  %s296_s23 = smov 8  }
  0x11   :  { %21 = dma.hbm_to_vmem [thread:$0]  %s360_s0, 256, %s16_s13, [#allocation3], %s295_s22, %s295_s22, %s296_s23  }
  0x12   :  { %s297_s26 = smov [#allocation4]   ;;  %s268_s30 = scalar_lea.hbm %s361_s1, 4096 }
  0x13   :  { %s27_s27 = sshll.u32 %s297_s26, 4  ;;  %p269_p8 = scmp.ne.s32.totalorder %s361_s1, %s268_s30  ;;  %s28_s27 = int_to_ptr.vmem [resolvable:$true] %s27_s27 }
  0x14   :  { %p272_p9 = scmp.lt.u32.totalorder %s268_s30, %s361_s1 }
  0x16   :  { %p274_p10 = pnand %p272_p9, %p269_p8 }
  0x18   :  { %277 = shalt.err (!%p274_p10)
}
  0x19   :  { %s278_s8 = scalar_lea.vmem %s28_s27, 4096  ;;  %p283_p12 = scmp.lt.s32.totalorder %s28_s27, %s28_s27 }
  0x1a   :  { %p279_p11 = scmp.ne.s32.totalorder %s28_s27, %s278_s8  ;;  %p284_p13 = scmp.lt.s32.totalorder %s278_s8, %s278_s8 }
  0x1c   :  { %p285_p0 = por %p284_p13, %p283_p12 }
  0x1e   :  { %p286_p1 = pnand %p285_p0, %p279_p11 }
  0x20   :  { %289 = shalt.err (!%p286_p1)
}
  0x21   :  { %s298_s0 = smov 256   ;;  %s299_s9 = smov 16  }
  0x22   :  { %33 = dma.hbm_to_vmem [thread:$0]  %s361_s1, 4096, %s28_s27, [#allocation5], %s298_s0, %s298_s0, %s299_s9  }
  0x23   :  { %290 = dma.done.wait [#allocation3], 256  }
  0x24   :  { %291 = vsyncadd [#allocation3], 4294967040 }
  0x25   :  { %292 = dma.done.wait [#allocation5], 4096  }
  0x26   :  { %293 = vsyncadd [#allocation5], 4294963200  ;;  %v300_v0 = vmov 0.0   ;;  %v69_v1 = vld [vmem:[#allocation4 + $0x8] sm:$0xff]  ;;  %v71_v2 = vld [vmem:[#allocation4 + $0x18] sm:$0xff]  ;;  %v48_v51 = vlaneseq }
  0x27   :  { %164 = vmatprep.mubr.f32.mxu0 %v300_v0  ;;  %170 = vmatprep.mubr.f32.mxu1 %v300_v0  ;;  %v68_v3 = vld [vmem:[#allocation4] sm:$0xff]  ;;  %v191_v4 = vpack.c.bf16 %v71_v2, %v69_v1  ;;  %v70_v5 = vld [vmem:[#allocation4 + $0x10] sm:$0xff]  ;;  %v73_v6 = vld [vmem:[#allocation4 + $0x28] sm:$0xff] }
  0x28   :  { %v75_v7 = vld [vmem:[#allocation4 + $0x38] sm:$0xff]  ;;  %v193_v8 = vpack.c.bf16 %v70_v5, %v68_v3  ;;  %v72_v10 = vld [vmem:[#allocation4 + $0x20] sm:$0xff]  ;;  %v74_v11 = vld [vmem:[#allocation4 + $0x30] sm:$0xff]  ;;  %v49_v52 = vshrl.u32 %v48_v51, 7 }
  0x29   :  { %v195_v9 = vpack.c.bf16 %v75_v7, %v73_v6  ;;  %v77_v12 = vld [vmem:[#allocation4 + $0x48] sm:$0xff]  ;;  %192 = vmatprep.subr.bf16.mxu0 %v191_v4  ;;  %223 = vmatprep.subr.bf16.mxu1 %v191_v4  ;;  %v79_v13 = vld [vmem:[#allocation4 + $0x58] sm:$0xff]  ;;  %v197_v14 = vpack.c.bf16 %v74_v11, %v72_v10  ;;  %v76_v16 = vld [vmem:[#allocation4 + $0x40] sm:$0xff] }
  0x2a   :  { %194 = vmatpush1.bf16.msra.mxu0 %v193_v8  ;;  %231 = vmatpush1.bf16.msra.mxu1 %v193_v8  ;;  %v199_v15 = vpack.c.bf16 %v79_v13, %v77_v12  ;;  %v78_v17 = vld [vmem:[#allocation4 + $0x50] sm:$0xff]  ;;  %v81_v18 = vld [vmem:[#allocation4 + $0x68] sm:$0xff]  ;;  %v83_v19 = vld [vmem:[#allocation4 + $0x78] sm:$0xff]  ;;  %v50_v53 = vsub.s32 0, %v49_v52  ;;  %v54_v55 = vsub.s32 1, %v49_v52 }
  0x2b   :  { %196 = vmatprep.subr.bf16.mxu0 %v195_v9  ;;  %224 = vmatprep.subr.bf16.mxu1 %v195_v9  ;;  %v201_v20 = vpack.c.bf16 %v78_v17, %v76_v16  ;;  %v203_v21 = vpack.c.bf16 %v83_v19, %v81_v18  ;;  %v80_v22 = vld [vmem:[#allocation4 + $0x60] sm:$0xff]  ;;  %v82_v23 = vld [vmem:[#allocation4 + $0x70] sm:$0xff]  ;;  %v85_v24 = vld [vmem:[#allocation4 + $0x88] sm:$0xff] }
  0x2c   :  { %v87_v25 = vld [vmem:[#allocation4 + $0x98] sm:$0xff]  ;;  %v205_v26 = vpack.c.bf16 %v82_v23, %v80_v22  ;;  %v84_v28 = vld [vmem:[#allocation4 + $0x80] sm:$0xff]  ;;  %v86_v29 = vld [vmem:[#allocation4 + $0x90] sm:$0xff] }
  0x2d   :  { %v207_v27 = vpack.c.bf16 %v87_v25, %v85_v24  ;;  %v89_v30 = vld [vmem:[#allocation4 + $0xa8] sm:$0xff]  ;;  %v91_v31 = vld [vmem:[#allocation4 + $0xb8] sm:$0xff]  ;;  %v209_v32 = vpack.c.bf16 %v86_v29, %v84_v28  ;;  %v88_v34 = vld [vmem:[#allocation4 + $0xa0] sm:$0xff] }
  0x2e   :  { %198 = vmatpush1.bf16.msra.mxu0 %v197_v14  ;;  %232 = vmatpush1.bf16.msra.mxu1 %v197_v14  ;;  %v211_v33 = vpack.c.bf16 %v91_v31, %v89_v30  ;;  %v90_v35 = vld [vmem:[#allocation4 + $0xb0] sm:$0xff]  ;;  %v93_v36 = vld [vmem:[#allocation4 + $0xc8] sm:$0xff]  ;;  %v95_v37 = vld [vmem:[#allocation4 + $0xd8] sm:$0xff] }
  0x2f   :  { %200 = vmatprep.subr.bf16.mxu0 %v199_v15  ;;  %225 = vmatprep.subr.bf16.mxu1 %v199_v15  ;;  %v213_v38 = vpack.c.bf16 %v90_v35, %v88_v34  ;;  %v215_v39 = vpack.c.bf16 %v95_v37, %v93_v36  ;;  %v92_v40 = vld [vmem:[#allocation4 + $0xc0] sm:$0xff]  ;;  %v94_v41 = vld [vmem:[#allocation4 + $0xd0] sm:$0xff]  ;;  %v97_v42 = vld [vmem:[#allocation4 + $0xe8] sm:$0xff] }
  0x30   :  { %v99_v43 = vld [vmem:[#allocation4 + $0xf8] sm:$0xff]  ;;  %v217_v44 = vpack.c.bf16 %v94_v41, %v92_v40  ;;  %v96_v46 = vld [vmem:[#allocation4 + $0xe0] sm:$0xff]  ;;  %v98_v47 = vld [vmem:[#allocation4 + $0xf0] sm:$0xff] }
  0x31   :  { %v219_v45 = vpack.c.bf16 %v99_v43, %v97_v42  ;;  %v221_v48 = vpack.c.bf16 %v98_v47, %v96_v46  ;;  %v62_v49 = vld [vmem:[#allocation2] sm:$0xff]  ;;  %v63_v50 = vld [vmem:[#allocation2 + $0x8] sm:$0xff] }
  0x32   :  { %202 = vmatpush1.bf16.msra.mxu0 %v201_v20  ;;  %233 = vmatpush1.bf16.msra.mxu1 %v201_v20  ;;  %v46_v54 = vld [vmem:[%s362_s2] sm:$0x3] }
  0x33   :  { %204 = vmatprep.subr.bf16.mxu0 %v203_v21  ;;  %226 = vmatprep.subr.bf16.mxu1 %v203_v21  ;;  %v51_v56 = vrot.slane %v46_v54, %v50_v53  ;;  %v55_v57 = vrot.slane %v46_v54, %v54_v55 }
  0x36   :  { %206 = vmatpush1.bf16.msra.mxu0 %v205_v26  ;;  %234 = vmatpush1.bf16.msra.mxu1 %v205_v26 }
  0x37   :  { %208 = vmatprep.subr.bf16.mxu0 %v207_v27  ;;  %227 = vmatprep.subr.bf16.mxu1 %v207_v27 }
  0x3a   :  { %210 = vmatpush1.bf16.msra.mxu0 %v209_v32  ;;  %235 = vmatpush1.bf16.msra.mxu1 %v209_v32 }
  0x3b   :  { %212 = vmatprep.subr.bf16.mxu0 %v211_v33  ;;  %228 = vmatprep.subr.bf16.mxu1 %v211_v33 }
  0x3e   :  { %214 = vmatpush1.bf16.msra.mxu0 %v213_v38  ;;  %236 = vmatpush1.bf16.msra.mxu1 %v213_v38 }
  0x3f   :  { %216 = vmatprep.subr.bf16.mxu0 %v215_v39  ;;  %229 = vmatprep.subr.bf16.mxu1 %v215_v39 }
  0x42   :  { %218 = vmatpush1.bf16.msra.mxu0 %v217_v44  ;;  %237 = vmatpush1.bf16.msra.mxu1 %v217_v44 }
  0x43   :  { %220 = vmatprep.subr.bf16.mxu0 %v219_v45  ;;  %230 = vmatprep.subr.bf16.mxu1 %v219_v45 }
  0x46   :  { %222 = vmatpush1.bf16.msra.mxu0 %v221_v48  ;;  %238 = vmatpush1.bf16.msra.mxu1 %v221_v48 }
  0x49   :  { %165 = vmatmul.mubr.f32.vlgmr.msra.gmra.mrb[0].mxu0 %v62_v49  ;;  %171 = vmatmul.mubr.f32.vlgmr.msra.gmra.mrb[0].mxu1 %v63_v50 }
 0x11c   :  { %v166_v58 = vpop.f32.mrb[0].mxu0  ;;  %v172_v59 = vpop.f32.mrb[0].mxu1 }
 0x11d   :  { %v177_v60 = vadd.f32 %v166_v58, %v51_v56  ;;  %v179_v61 = vadd.f32 %v172_v59, %v51_v56  ;;  %v168_v62 = vpop.f32.mrb[1].mxu0  ;;  %v174_v63 = vpop.f32.mrb[1].mxu1 }
 0x11e   :  { %v178_v0 = vadd.f32 %v168_v62, %v55_v57  ;;  %v180_v1 = vadd.f32 %v174_v63, %v55_v57 }
 0x11f   :  { %181 = vst [vmem:[%s363_s3] sm:$0xff] %v177_v60  ;;  %183 = vst [vmem:[%s363_s3 + $0x10] sm:$0xff] %v179_v61 }
 0x120   :  { %182 = vst [vmem:[%s363_s3 + $0x8] sm:$0xff] %v178_v0  ;;  %184 = vst [vmem:[%s363_s3 + $0x18] sm:$0xff] %v180_v1 }
 0x121   :  { %189 = vsyncpa [#allocation3], 1 }
 0x122   :  { %190 = vsyncpa [#allocation5], 1 }

</bundles_post_ra>
